<compile_context>
chip_gen: v7x
topology: tpu7x:2x2x1
jax: 0.10.0
libtpu: 0.0.40
codegen_flags: <defaults>
</compile_context>

<pallas_src>
import functools

import jax
import jax.numpy as jnp
from jax.experimental import pallas as pl
from jax.experimental.pallas import tpu as pltpu


def _fused_mlp_kernel(*refs, num_layers: int):
    """refs = (x_ref, w0, b0, w1, b1, ..., w{L-1}, b{L-1}, o_ref).

    x:  [TM, D_in]        bf16 (MXU-ready)
    wi: [D_in_i, D_out_i] bf16 (unpadded, VMEM-resident across grid steps)
    bi: [1, D_out_i]      f32
    o:  [TM, n_classes]   f32
    """
    x_ref = refs[0]
    o_ref = refs[-1]
    wb = refs[1:-1]

    h = x_ref[...]  # bf16 activations straight into the MXU
    for i in range(num_layers):
        w = wb[2 * i][...]
        b = wb[2 * i + 1][...]
        # bf16 MXU operands, f32 accumulation.
        acc = jnp.dot(h, w, preferred_element_type=jnp.float32)
        acc = acc + b                      # f32 epilogue
        if i < num_layers - 1:
            acc = jnp.maximum(acc, 0.0)    # ReLU on hidden layers only
            h = acc.astype(w.dtype)        # back to bf16 for the next MXU pass
        else:
            h = acc                        # final logits stay f32
    o_ref[...] = h.astype(o_ref.dtype)


def dnn_forward(x_nchw, params, *, matmul_dtype=jnp.bfloat16, tm=512):
    """Forward pass of DNN: Flatten -> (Linear -> ReLU)* -> Linear.

    Entire MLP runs in one fused Pallas kernel.  Batch is tiled with an M grid
    (block TM rows); weights/biases stay VMEM-resident via constant index_maps.
    """
    n = x_nchw.shape[0]
    # nn.Flatten() on NCHW + cast to the matmul dtype (fuses into the producer).
    x = x_nchw.reshape(n, -1).astype(matmul_dtype)
    d_in = x.shape[1]
    num_layers = len(params)
    n_classes = params[-1][0].shape[1]

    # One block if the batch is small; otherwise TM-row tiles (TM % 8 == 0).
    tm_eff = n if n <= tm else tm
    grid_m = pl.cdiv(n, tm_eff)

    flat_inputs = [x]
    in_specs = [pl.BlockSpec((tm_eff, d_in), lambda i: (i, 0))]
    for (w, b) in params:
        flat_inputs.append(w.astype(matmul_dtype))          # bf16 weights: half DMA
        flat_inputs.append(b.reshape(1, -1).astype(jnp.float32))
        in_specs.append(pl.BlockSpec(w.shape, lambda i: (0, 0)))          # resident
        in_specs.append(pl.BlockSpec((1, b.shape[-1]), lambda i: (0, 0)))  # resident

    kernel = functools.partial(_fused_mlp_kernel, num_layers=num_layers)

    return pl.pallas_call(
        kernel,
        out_shape=jax.ShapeDtypeStruct((n, n_classes), jnp.float32),
        grid_spec=pltpu.PrefetchScalarGridSpec(
            num_scalar_prefetch=0,
            grid=(grid_m,),
            in_specs=in_specs,
            out_specs=pl.BlockSpec((tm_eff, n_classes), lambda i: (i, 0)),
        ),
        compiler_params=pltpu.CompilerParams(
            dimension_semantics=("parallel",)),   # v7x: shard batch over 2 TCs
    )(*flat_inputs)


def init_dnn_params(key, in_features, linear_layers, n_classes,
                    dtype=jnp.float32):
    """Deterministic init mimicking PyTorch Linear default
    (U[-1/sqrt(fan_in), 1/sqrt(fan_in)])."""
    params = []
    dims = [in_features] + list(linear_layers) + [n_classes]
    for i in range(len(dims) - 1):
        fan_in, fan_out = dims[i], dims[i + 1]
        key, kw, kb = jax.random.split(key, 3)
        bound = 1.0 / jnp.sqrt(jnp.asarray(fan_in, dtype))
        w = jax.random.uniform(kw, (fan_in, fan_out), dtype, -bound, bound)
        b = jax.random.uniform(kb, (fan_out,), dtype, -bound, bound)
        params.append((w, b))
    return params


def _ref_forward(x_nchw, params):
    ref = x_nchw.reshape(x_nchw.shape[0], -1)
    for i, (w, b) in enumerate(params):
        ref = ref @ w + b
        if i < len(params) - 1:
            ref = jnp.maximum(ref, 0.0)
    return ref


if __name__ == "__main__":
    key = jax.random.PRNGKey(0)
    kx, kx2, kp = jax.random.split(key, 3)

    # Shapes consistent with the module:
    # DNN(in_channels=4, params={'linear_layers': [32, 32]}, n_classes=10)
    batch, channels, height, width = 2, 4, 16, 16
    linear_layers = [32, 32]
    n_classes = 10

    x = jax.random.normal(kx, (batch, channels, height, width), jnp.float32)
    in_features = channels * height * width  # LazyLinear infers this
    params = init_dnn_params(kp, in_features, linear_layers, n_classes)

    # Small-batch path (single block, gridless in effect).
    fwd = jax.jit(dnn_forward)
    out = jax.block_until_ready(fwd(x, params))
    assert out.shape == (batch, n_classes), out.shape
    ref = _ref_forward(x, params)
    assert jnp.allclose(out, ref, atol=1e-1, rtol=1e-1), (
        float(jnp.max(jnp.abs(out - ref))))

    # Exercise the M-grid path (multiple row blocks + a ragged edge block).
    n2 = 20
    x2 = jax.random.normal(kx2, (n2, channels, height, width), jnp.float32)
    fwd_grid = jax.jit(functools.partial(dnn_forward, tm=8))
    out2 = jax.block_until_ready(fwd_grid(x2, params))
    assert out2.shape == (n2, n_classes), out2.shape
    ref2 = _ref_forward(x2, params)
    assert jnp.allclose(out2, ref2, atol=1e-1, rtol=1e-1), (
        float(jnp.max(jnp.abs(out2 - ref2))))

    print("KERNEL_OK")
</pallas_src>

<mosaic_0001>
module attributes {stable_mosaic.version = 11 : i64} {
  func.func @_fused_mlp_kernel(%arg0: i32, %arg1: memref<2x1024xbf16, #tpu.memory_space<vmem>>, %arg2: memref<1024x32xbf16, #tpu.memory_space<vmem>>, %arg3: memref<1x32xf32, #tpu.memory_space<vmem>>, %arg4: memref<32x32xbf16, #tpu.memory_space<vmem>>, %arg5: memref<1x32xf32, #tpu.memory_space<vmem>>, %arg6: memref<32x10xbf16, #tpu.memory_space<vmem>>, %arg7: memref<1x10xf32, #tpu.memory_space<vmem>>, %arg8: memref<2x10xf32, #tpu.memory_space<vmem>>) attributes {dimension_semantics = [#tpu.dimension_semantics<parallel>], iteration_bounds = array<i64: 1>, scalar_prefetch = 0 : i64, scratch_operands = 0 : i64, tpu.core_type = #tpu.core_type<tc>, window_params = [{transform_indices = @transform_0, window_bounds = array<i64: 2, 1024>}, {pipeline_mode = #tpu.pipeline_mode<synchronous>, transform_indices = @transform_1, window_bounds = array<i64: 1024, 32>}, {pipeline_mode = #tpu.pipeline_mode<synchronous>, transform_indices = @transform_2, window_bounds = array<i64: 1, 32>}, {pipeline_mode = #tpu.pipeline_mode<synchronous>, transform_indices = @transform_3, window_bounds = array<i64: 32, 32>}, {pipeline_mode = #tpu.pipeline_mode<synchronous>, transform_indices = @transform_4, window_bounds = array<i64: 1, 32>}, {pipeline_mode = #tpu.pipeline_mode<synchronous>, transform_indices = @transform_5, window_bounds = array<i64: 32, 10>}, {pipeline_mode = #tpu.pipeline_mode<synchronous>, transform_indices = @transform_6, window_bounds = array<i64: 1, 10>}, {transform_indices = @transform_7, window_bounds = array<i64: 2, 10>}]} {
    %c0 = arith.constant 0 : index
    %c0_0 = arith.constant 0 : index
    %0 = vector.load %arg1[%c0, %c0_0] : memref<2x1024xbf16, #tpu.memory_space<vmem>>, vector<2x1024xbf16>
    %c0_1 = arith.constant 0 : index
    %c0_2 = arith.constant 0 : index
    %1 = vector.load %arg2[%c0_1, %c0_2] : memref<1024x32xbf16, #tpu.memory_space<vmem>>, vector<1024x32xbf16>
    %c0_3 = arith.constant 0 : index
    %c0_4 = arith.constant 0 : index
    %2 = vector.load %arg3[%c0_3, %c0_4] : memref<1x32xf32, #tpu.memory_space<vmem>>, vector<1x32xf32>
    %cst = arith.constant dense<0.000000e+00> : vector<2x32xf32>
    %3 = tpu.matmul %0, %1, %cst {dimension_numbers = #tpu.dot_dimension_numbers<[1], [0], [0], [1], [0, 0, 1, 1], [], []>} : vector<2x1024xbf16>, vector<1024x32xbf16>, vector<2x32xf32> -> vector<2x32xf32>
    %4 = vector.broadcast %2 : vector<1x32xf32> to vector<2x32xf32>
    %5 = arith.addf %3, %4 : vector<2x32xf32>
    %cst_5 = arith.constant 0.000000e+00 : f32
    %6 = vector.broadcast %cst_5 : f32 to vector<2x32xf32>
    %7 = arith.maximumf %5, %6 : vector<2x32xf32>
    %8 = arith.truncf %7 : vector<2x32xf32> to vector<2x32xbf16>
    %c0_6 = arith.constant 0 : index
    %c0_7 = arith.constant 0 : index
    %9 = vector.load %arg4[%c0_6, %c0_7] : memref<32x32xbf16, #tpu.memory_space<vmem>>, vector<32x32xbf16>
    %c0_8 = arith.constant 0 : index
    %c0_9 = arith.constant 0 : index
    %10 = vector.load %arg5[%c0_8, %c0_9] : memref<1x32xf32, #tpu.memory_space<vmem>>, vector<1x32xf32>
    %cst_10 = arith.constant dense<0.000000e+00> : vector<2x32xf32>
    %11 = tpu.matmul %8, %9, %cst_10 {dimension_numbers = #tpu.dot_dimension_numbers<[1], [0], [0], [1], [0, 0, 1, 1], [], []>} : vector<2x32xbf16>, vector<32x32xbf16>, vector<2x32xf32> -> vector<2x32xf32>
    %12 = vector.broadcast %10 : vector<1x32xf32> to vector<2x32xf32>
    %13 = arith.addf %11, %12 : vector<2x32xf32>
    %cst_11 = arith.constant 0.000000e+00 : f32
    %14 = vector.broadcast %cst_11 : f32 to vector<2x32xf32>
    %15 = arith.maximumf %13, %14 : vector<2x32xf32>
    %16 = arith.truncf %15 : vector<2x32xf32> to vector<2x32xbf16>
    %c0_12 = arith.constant 0 : index
    %c0_13 = arith.constant 0 : index
    %17 = vector.load %arg6[%c0_12, %c0_13] : memref<32x10xbf16, #tpu.memory_space<vmem>>, vector<32x10xbf16>
    %c0_14 = arith.constant 0 : index
    %c0_15 = arith.constant 0 : index
    %18 = vector.load %arg7[%c0_14, %c0_15] : memref<1x10xf32, #tpu.memory_space<vmem>>, vector<1x10xf32>
    %cst_16 = arith.constant dense<0.000000e+00> : vector<2x10xf32>
    %19 = tpu.matmul %16, %17, %cst_16 {dimension_numbers = #tpu.dot_dimension_numbers<[1], [0], [0], [1], [0, 0, 1, 1], [], []>} : vector<2x32xbf16>, vector<32x10xbf16>, vector<2x10xf32> -> vector<2x10xf32>
    %20 = vector.broadcast %18 : vector<1x10xf32> to vector<2x10xf32>
    %21 = arith.addf %19, %20 : vector<2x10xf32>
    %c0_17 = arith.constant 0 : index
    %c0_18 = arith.constant 0 : index
    %22 = vector.load %arg8[%c0_17, %c0_18] : memref<2x10xf32, #tpu.memory_space<vmem>>, vector<2x10xf32>
    tpu.vector_store %arg8[%c0_17, %c0_18], %21 {strides = array<i32>} : memref<2x10xf32, #tpu.memory_space<vmem>>, vector<2x10xf32>,
    return
  }
  func.func @transform_0(%arg0: i32) -> (i32, i32) {
    %c0_i32 = arith.constant 0 : i32
    %c0_i32_0 = arith.constant 0 : i32
    return %arg0, %c0_i32 : i32, i32
  }
  func.func @transform_1(%arg0: i32) -> (i32, i32) {
    %c0_i32 = arith.constant 0 : i32
    %c0_i32_0 = arith.constant 0 : i32
    %c0_i32_1 = arith.constant 0 : i32
    return %c0_i32, %c0_i32_0 : i32, i32
  }
  func.func @transform_2(%arg0: i32) -> (i32, i32) {
    %c0_i32 = arith.constant 0 : i32
    %c0_i32_0 = arith.constant 0 : i32
    %c0_i32_1 = arith.constant 0 : i32
    return %c0_i32, %c0_i32_0 : i32, i32
  }
  func.func @transform_3(%arg0: i32) -> (i32, i32) {
    %c0_i32 = arith.constant 0 : i32
    %c0_i32_0 = arith.constant 0 : i32
    %c0_i32_1 = arith.constant 0 : i32
    return %c0_i32, %c0_i32_0 : i32, i32
  }
  func.func @transform_4(%arg0: i32) -> (i32, i32) {
    %c0_i32 = arith.constant 0 : i32
    %c0_i32_0 = arith.constant 0 : i32
    %c0_i32_1 = arith.constant 0 : i32
    return %c0_i32, %c0_i32_0 : i32, i32
  }
  func.func @transform_5(%arg0: i32) -> (i32, i32) {
    %c0_i32 = arith.constant 0 : i32
    %c0_i32_0 = arith.constant 0 : i32
    %c0_i32_1 = arith.constant 0 : i32
    return %c0_i32, %c0_i32_0 : i32, i32
  }
  func.func @transform_6(%arg0: i32) -> (i32, i32) {
    %c0_i32 = arith.constant 0 : i32
    %c0_i32_0 = arith.constant 0 : i32
    %c0_i32_1 = arith.constant 0 : i32
    return %c0_i32, %c0_i32_0 : i32, i32
  }
  func.func @transform_7(%arg0: i32) -> (i32, i32) {
    %c0_i32 = arith.constant 0 : i32
    %c0_i32_0 = arith.constant 0 : i32
    return %arg0, %c0_i32 : i32, i32
  }
}

</mosaic_0001>

<bundles_post_ra>
// kernel: dnn_forward.1
= control target key start
LH: loop header
LB: loop body
LE: loop exit
PB: predicated region body
PF: predicated region fallthrough
CT: control target
= control target key end

     0   :  { %v169_v28 = vlaneseq  ;;  %v1199_v36 = vmov 1966171168   ;;  %s1484_s0 = inlined_call_operand.vmem [shape: bf16[2,1024], index: 0, kind: input, shape index: {}]   ;;  %s1485_s1 = inlined_call_operand.vmem [shape: bf16[1024,32], index: 1, kind: input, shape index: {}]   ;;  %s1486_s2 = inlined_call_operand.vmem [shape: f32[1,32], index: 2, kind: input, shape index: {}]   ;;  %s1487_s3 = inlined_call_operand.vmem [shape: bf16[32,32], index: 3, kind: input, shape index: {}]   ;;  %s1488_s4 = inlined_call_operand.vmem [shape: f32[1,32], index: 4, kind: input, shape index: {}]   ;;  %s1489_s5 = inlined_call_operand.vmem [shape: bf16[32,10], index: 5, kind: input, shape index: {}]   ;;  %s1490_s6 = inlined_call_operand.vmem [shape: f32[1,10], index: 6, kind: input, shape index: {}]   ;;  %s1491_s7 = inlined_call_operand.hbm [shape: f32[2,10], index: 7, kind: output, shape index: {}]  }
   0x1   :  { %v1106_v0 = vld [vmem:[%s1485_s1 + $0x40] sm:$0xff]   ;;  %v1110_v4 = vld [vmem:[%s1485_s1 + $0x48] sm:$0xff]   ;;  %v1114_v8 = vld [vmem:[%s1485_s1 + $0x50] sm:$0xff]   ;;  %v167_v37 = vunpack.c.l.s4 %v1199_v36 }
   0x2   :  { %v1107_v1 = vld [vmem:[%s1485_s1 + $0xc0] sm:$0xff]   ;;  %992 = vmatprep.subr.bf16.mxu0 %v1106_v0  ;;  %v1111_v5 = vld [vmem:[%s1485_s1 + $0xc8] sm:$0xff]   ;;  %v1115_v9 = vld [vmem:[%s1485_s1 + $0xd0] sm:$0xff]   ;;  %v170_v33 = vshrl.u32 %v169_v28, 7 }
   0x3   :  { %v1108_v2 = vld [vmem:[%s1485_s1] sm:$0xff]   ;;  %1014 = vmatprep.subr.bf16.mxu1 %v1107_v1  ;;  %v1112_v6 = vld [vmem:[%s1485_s1 + $0x8] sm:$0xff]   ;;  %v1116_v10 = vld [vmem:[%s1485_s1 + $0x10] sm:$0xff]   ;;  %v168_v40 = vunpack.c.0.s8 %v167_v37 }
   0x4   :  { %v1109_v3 = vld [vmem:[%s1485_s1 + $0x80] sm:$0xff]   ;;  %993 = vmatpush3.bf16.msra.mxu0 %v1108_v2  ;;  %v1113_v7 = vld [vmem:[%s1485_s1 + $0x88] sm:$0xff]   ;;  %v1117_v11 = vld [vmem:[%s1485_s1 + $0x90] sm:$0xff]  }
   0x5   :  { %1015 = vmatpush3.bf16.msra.mxu1 %v1109_v3  ;;  %994 = vmatprep.subr.bf16.mxu0 %v1110_v4  ;;  %v1118_v12 = vld [vmem:[%s1485_s1 + $0x58] sm:$0xff]   ;;  %v1122_v16 = vld [vmem:[%s1485_s1 + $0x60] sm:$0xff]   ;;  %v1126_v20 = vld [vmem:[%s1485_s1 + $0x68] sm:$0xff]   ;;  %v1348_v41 = vsub.s32 %v168_v40, %v170_v33 }
   0x6   :  { %1016 = vmatprep.subr.bf16.mxu1 %v1111_v5  ;;  %v1119_v13 = vld [vmem:[%s1485_s1 + $0xd8] sm:$0xff]   ;;  %v1123_v17 = vld [vmem:[%s1485_s1 + $0xe0] sm:$0xff]   ;;  %v1127_v21 = vld [vmem:[%s1485_s1 + $0xe8] sm:$0xff]  }
   0x7   :  { %v1120_v14 = vld [vmem:[%s1485_s1 + $0x18] sm:$0xff]   ;;  %v1124_v18 = vld [vmem:[%s1485_s1 + $0x20] sm:$0xff]   ;;  %v1128_v22 = vld [vmem:[%s1485_s1 + $0x28] sm:$0xff]  }
   0x8   :  { %995 = vmatpush3.bf16.msra.mxu0 %v1112_v6  ;;  %v1121_v15 = vld [vmem:[%s1485_s1 + $0x98] sm:$0xff]   ;;  %v1125_v19 = vld [vmem:[%s1485_s1 + $0xa0] sm:$0xff]   ;;  %v1129_v23 = vld [vmem:[%s1485_s1 + $0xa8] sm:$0xff]  }
   0x9   :  { %1017 = vmatpush3.bf16.msra.mxu1 %v1113_v7  ;;  %996 = vmatprep.subr.bf16.mxu0 %v1114_v8  ;;  %v1130_v24 = vld [vmem:[%s1485_s1 + $0x70] sm:$0xff]   ;;  %v1134_v29 = vld [vmem:[%s1485_s1 + $0x78] sm:$0xff]   ;;  %v28_v34 = vld [vmem:[%s1484_s0] sm:$0xff] }
   0xa   :  { %1018 = vmatprep.subr.bf16.mxu1 %v1115_v9  ;;  %v1131_v25 = vld [vmem:[%s1485_s1 + $0xf0] sm:$0xff]   ;;  %v1135_v30 = vld [vmem:[%s1485_s1 + $0xf8] sm:$0xff]   ;;  %v1139_v35 = vld [vmem:[%s1485_s1 + $0x140] sm:$0xff]   ;;  %v165_v39 = vcombine.high %v28_v34, %v28_v34  ;;  %v172_v42 = vrot.slane %v28_v34, %v1348_v41 }
   0xb   :  { %v1132_v26 = vld [vmem:[%s1485_s1 + $0x30] sm:$0xff]   ;;  %v1136_v31 = vld [vmem:[%s1485_s1 + $0x38] sm:$0xff]   ;;  %v1140_v38 = vld [vmem:[%s1485_s1 + $0x1c0] sm:$0xff]  }
   0xc   :  { %997 = vmatpush3.bf16.msra.mxu0 %v1116_v10  ;;  %v1133_v27 = vld [vmem:[%s1485_s1 + $0xb0] sm:$0xff]   ;;  %v1137_v32 = vld [vmem:[%s1485_s1 + $0xb8] sm:$0xff]   ;;  %v1352_v43 = vrot.slane %v165_v39, %v1348_v41  ;;  %v180_v44 = vcombine.high %v172_v42, %v172_v42  ;;  %v188_v45 = vrot.slane %v172_v42, %v1348_v41  ;;  %v1141_v47 = vld [vmem:[%s1485_s1 + $0x100] sm:$0xff]  }
   0xd   :  { %1019 = vmatpush3.bf16.msra.mxu1 %v1117_v11  ;;  %998 = vmatprep.subr.bf16.mxu0 %v1118_v12  ;;  %v1142_v49 = vld [vmem:[%s1485_s1 + $0x180] sm:$0xff]   ;;  %v1143_v52 = vld [vmem:[%s1485_s1 + $0x148] sm:$0xff]   ;;  %v1147_v58 = vld [vmem:[%s1485_s1 + $0x150] sm:$0xff]  }
   0xe   :  { %1020 = vmatprep.subr.bf16.mxu1 %v1119_v13  ;;  %v181_v46 = vcombine.high %v1352_v43, %v1352_v43  ;;  %v202_v48 = vrot.slane %v180_v44, %v1348_v41  ;;  %v210_v51 = vcombine.high %v188_v45, %v188_v45  ;;  %v1144_v54 = vld [vmem:[%s1485_s1 + $0x1c8] sm:$0xff]   ;;  %v1148_v59 = vld [vmem:[%s1485_s1 + $0x1d0] sm:$0xff]   ;;  %v1151_v62 = vld [vmem:[%s1485_s1 + $0x158] sm:$0xff]  }
   0xf   :  { %v1145_v55 = vld [vmem:[%s1485_s1 + $0x108] sm:$0xff]   ;;  %v1149_v60 = vld [vmem:[%s1485_s1 + $0x110] sm:$0xff]   ;;  %v1152_v63 = vld [vmem:[%s1485_s1 + $0x1d8] sm:$0xff]  }
  0x10   :  { %999 = vmatpush3.bf16.msra.mxu0 %v1120_v14  ;;  %v209_v50 = vrot.slane %v181_v46, %v1348_v41  ;;  %638 = vmatprep.mubr.bf16.mxu0 %v202_v48  ;;  %v212_v53 = vcombine.high %v202_v48, %v202_v48  ;;  %v1146_v57 = vld [vmem:[%s1485_s1 + $0x188] sm:$0xff]   ;;  %v1150_v61 = vld [vmem:[%s1485_s1 + $0x190] sm:$0xff]   ;;  %v1153_v0 = vld [vmem:[%s1485_s1 + $0x118] sm:$0xff]  }
  0x11   :  { %1021 = vmatpush3.bf16.msra.mxu1 %v1121_v15  ;;  %1000 = vmatprep.subr.bf16.mxu0 %v1122_v16  ;;  %v1154_v1 = vld [vmem:[%s1485_s1 + $0x198] sm:$0xff]   ;;  %v1155_v2 = vld [vmem:[%s1485_s1 + $0x160] sm:$0xff]   ;;  %v1159_v6 = vld [vmem:[%s1485_s1 + $0x168] sm:$0xff]  }
  0x12   :  { %1022 = vmatprep.subr.bf16.mxu1 %v1123_v17  ;;  %v213_v56 = vcombine.high %v209_v50, %v209_v50  ;;  %678 = vmatprep.mubr.bf16.mxu1 %v212_v53  ;;  %v1156_v3 = vld [vmem:[%s1485_s1 + $0x1e0] sm:$0xff]   ;;  %v1160_v7 = vld [vmem:[%s1485_s1 + $0x1e8] sm:$0xff]   ;;  %v1163_v10 = vld [vmem:[%s1485_s1 + $0x170] sm:$0xff]  }
  0x13   :  { %v1157_v4 = vld [vmem:[%s1485_s1 + $0x120] sm:$0xff]   ;;  %v1161_v8 = vld [vmem:[%s1485_s1 + $0x128] sm:$0xff]   ;;  %v1164_v11 = vld [vmem:[%s1485_s1 + $0x1f0] sm:$0xff]  }
  0x14   :  { %1001 = vmatpush3.bf16.msra.mxu0 %v1124_v18  ;;  %v1158_v5 = vld [vmem:[%s1485_s1 + $0x1a0] sm:$0xff]   ;;  %v1162_v9 = vld [vmem:[%s1485_s1 + $0x1a8] sm:$0xff]   ;;  %v1165_v12 = vld [vmem:[%s1485_s1 + $0x130] sm:$0xff]  }
  0x15   :  { %1023 = vmatpush3.bf16.msra.mxu1 %v1125_v19  ;;  %1002 = vmatprep.subr.bf16.mxu0 %v1126_v20 }
  0x16   :  { %1024 = vmatprep.subr.bf16.mxu1 %v1127_v21 }
  0x18   :  { %1003 = vmatpush3.bf16.msra.mxu0 %v1128_v22 }
  0x19   :  { %1025 = vmatpush3.bf16.msra.mxu1 %v1129_v23  ;;  %1004 = vmatprep.subr.bf16.mxu0 %v1130_v24 }
  0x1a   :  { %1026 = vmatprep.subr.bf16.mxu1 %v1131_v25 }
  0x1c   :  { %1005 = vmatpush3.bf16.msra.mxu0 %v1132_v26 }
  0x1d   :  { %1027 = vmatpush3.bf16.msra.mxu1 %v1133_v27  ;;  %1006 = vmatprep.subr.bf16.mxu0 %v1134_v29 }
  0x1e   :  { %1028 = vmatprep.subr.bf16.mxu1 %v1135_v30 }
  0x20   :  { %1007 = vmatpush3.bf16.msra.mxu0 %v1136_v31 }
  0x21   :  { %1029 = vmatpush3.bf16.msra.mxu1 %v1137_v32  ;;  %1036 = vmatprep.subr.bf16.mxu0 %v1139_v35 }
  0x22   :  { %1058 = vmatprep.subr.bf16.mxu1 %v1140_v38 }
  0x23   :  { %639 = vmatmul.mubr.bf16.vlgmr.msra.gmra.mrb[0].mxu0 %v188_v45 }
  0x24   :  { %1037 = vmatpush3.bf16.msra.mxu0 %v1141_v47  ;;  %679 = vmatmul.mubr.bf16.vlgmr.msra.gmra.mrb[0].mxu1 %v210_v51 }
  0x25   :  { %1038 = vmatprep.subr.bf16.mxu0 %v1143_v52  ;;  %1059 = vmatpush3.bf16.msra.mxu1 %v1142_v49 }
  0x26   :  { %718 = vmatprep.mubr.bf16.mxu0 %v209_v50  ;;  %1060 = vmatprep.subr.bf16.mxu1 %v1144_v54 }
  0x27   :  { %758 = vmatprep.mubr.bf16.mxu1 %v213_v56 }
  0x28   :  { %1039 = vmatpush3.bf16.msra.mxu0 %v1145_v55 }
  0x29   :  { %1040 = vmatprep.subr.bf16.mxu0 %v1147_v58  ;;  %1061 = vmatpush3.bf16.msra.mxu1 %v1146_v57 }
  0x2a   :  { %1062 = vmatprep.subr.bf16.mxu1 %v1148_v59 }
  0x2c   :  { %1041 = vmatpush3.bf16.msra.mxu0 %v1149_v60 }
  0x2d   :  { %1042 = vmatprep.subr.bf16.mxu0 %v1151_v62  ;;  %1063 = vmatpush3.bf16.msra.mxu1 %v1150_v61 }
  0x2e   :  { %1064 = vmatprep.subr.bf16.mxu1 %v1152_v63 }
  0x30   :  { %1043 = vmatpush3.bf16.msra.mxu0 %v1153_v0 }
  0x31   :  { %1044 = vmatprep.subr.bf16.mxu0 %v1155_v2  ;;  %1065 = vmatpush3.bf16.msra.mxu1 %v1154_v1 }
  0x32   :  { %1066 = vmatprep.subr.bf16.mxu1 %v1156_v3 }
  0x34   :  { %1045 = vmatpush3.bf16.msra.mxu0 %v1157_v4 }
  0x35   :  { %1046 = vmatprep.subr.bf16.mxu0 %v1159_v6  ;;  %1067 = vmatpush3.bf16.msra.mxu1 %v1158_v5 }
  0x36   :  { %1068 = vmatprep.subr.bf16.mxu1 %v1160_v7 }
  0x38   :  { %1047 = vmatpush3.bf16.msra.mxu0 %v1161_v8 }
  0x39   :  { %12 = vsyncpa [#allocation3], 0  ;;  %1048 = vmatprep.subr.bf16.mxu0 %v1163_v10  ;;  %v1167_v13 = vld [vmem:[%s1485_s1 + $0x178] sm:$0xff]   ;;  %1069 = vmatpush3.bf16.msra.mxu1 %v1162_v9  ;;  %v1166_v14 = vld [vmem:[%s1485_s1 + $0x1b0] sm:$0xff]   ;;  %v195_v17 = vrot.slane %v1352_v43, %v1348_v41  ;;  %v1200_v21 = vmov 0.0   ;;  %vm1201_vm0 = vmmov 0  }
  0x3a   :  { %1070 = vmatprep.subr.bf16.mxu1 %v1164_v11  ;;  %v1168_v15 = vld [vmem:[%s1485_s1 + $0x1f8] sm:$0xff]   ;;  %v1171_v20 = vld [vmem:[%s1487_s3] sm:$0xff]   ;;  %v1172_v22 = vld [vmem:[%s1487_s3 + $0x8] sm:$0xff]   ;;  %vm791_vm1 = vcmask 261120   ;;  %s1202_s24 = smov [#allocation2]   ;;  %vm903_vm2 = vcmask 74752  }
  0x3b   :  { %v1169_v16 = vld [vmem:[%s1485_s1 + $0x138] sm:$0xff]   ;;  %v211_v19 = vcombine.high %v195_v17, %v195_v17  ;;  %v1173_v23 = vld [vmem:[%s1489_s5] sm:$0xff]   ;;  %v1174_v51 = vld [vmem:[%s1489_s5 + $0x8] sm:$0xff]   ;;  %s911_s0 = sshll.u32 %s1202_s24, 4  ;;  %s912_s0 = int_to_ptr.vmem [resolvable:$true] %s911_s0 }
  0x3c   :  { %1049 = vmatpush3.bf16.msra.mxu0 %v1165_v12  ;;  %v1170_v18 = vld [vmem:[%s1485_s1 + $0x1b8] sm:$0xff]   ;;  %v919_v25 = vld [vmem:[%s1486_s2] ss:$0 sm:$0xff]  ;;  %p1180_p1 = scmp.lt.s32.totalorder %s912_s0, %s912_s0 }
  0x3d   :  { %1050 = vmatprep.subr.bf16.mxu0 %v1167_v13  ;;  %1071 = vmatpush3.bf16.msra.mxu1 %v1166_v14  ;;  %v984_v52 = vld [vmem:[%s1488_s4] ss:$0 sm:$0xff]  ;;  %s1175_s4 = scalar_lea.vmem %s912_s0, 32 }
  0x3e   :  { %1072 = vmatprep.subr.bf16.mxu1 %v1168_v15  ;;  %v988_v60 = vld [vmem:[%s1490_s6] ss:$0 sm:$0xff]  ;;  %p1176_p0 = scmp.ne.s32.totalorder %s912_s0, %s1175_s4  ;;  %p1181_p2 = scmp.lt.s32.totalorder %s1175_s4, %s1175_s4 }
  0x40   :  { %1051 = vmatpush3.bf16.msra.mxu0 %v1169_v16  ;;  %p1182_p3 = por %p1181_p2, %p1180_p1 }
  0x41   :  { %1073 = vmatpush3.bf16.msra.mxu1 %v1170_v18  ;;  %1086 = vmatprep.subr.bf16.mxu0 %v1200_v21 }
  0x42   :  { %1094 = vmatprep.subr.bf16.mxu1 %v1200_v21  ;;  %p1183_p4 = pnand %p1182_p3, %p1176_p0 }
  0x43   :  { %719 = vmatmul.mubr.bf16.vlgmr.msra.gmra.mrb[4].mxu0 %v195_v17 }
  0x44   :  { %759 = vmatmul.mubr.bf16.vlgmr.msra.gmra.mrb[4].mxu1 %v211_v19  ;;  %1087 = vmatpush3.bf16.msra.mxu0 %v1171_v20 }
  0x45   :  { %1088 = vmatprep.subr.bf16.mxu0 %v1200_v21  ;;  %1090 = vmatprep.mubr.msk.bf16.mxu0 %vm1201_vm0, %v1200_v21 }
  0x46   :  { %1098 = vmatprep.mubr.msk.bf16.mxu1 %vm1201_vm0, %v1200_v21  ;;  %1095 = vmatpush3.bf16.msra.mxu1 %v1173_v23 }
  0x47   :  { %1096 = vmatprep.subr.bf16.mxu1 %v1200_v21 }
  0x48   :  { %1089 = vmatpush3.bf16.msra.mxu0 %v1172_v22 }
  0x4a   :  { %1097 = vmatpush3.bf16.msra.mxu1 %v1174_v51 }
  0xf6   :  { %v1008_v24 = vpop.f32.mrb[0].mxu0 }
  0xf7   :  { %v1009_v26 = vpop.f32.mrb[1].mxu0  ;;  %v1030_v27 = vpop.f32.mrb[0].mxu1 }
  0xf8   :  { %v1010_v28 = vadd.f32 %v1009_v26, %v1008_v24  ;;  %v1011_v29 = vpop.f32.mrb[2].mxu0  ;;  %v1031_v30 = vpop.f32.mrb[1].mxu1 }
  0xf9   :  { %v1012_v31 = vpop.f32.mrb[3].mxu0  ;;  %v1032_v33 = vadd.f32 %v1031_v30, %v1030_v27  ;;  %v1033_v34 = vpop.f32.mrb[2].mxu1 }
  0xfa   :  { %v641_v32 = vadd.f32 %v1010_v28, %v919_v25  ;;  %v1034_v35 = vpop.f32.mrb[3].mxu1 }
  0xfc   :  { %v681_v36 = vadd.f32 %v1032_v33, %v641_v32 }
 0x116   :  { %v1052_v37 = vpop.f32.mrb[4].mxu0 }
 0x117   :  { %v1053_v38 = vpop.f32.mrb[5].mxu0  ;;  %v1074_v39 = vpop.f32.mrb[4].mxu1 }
 0x118   :  { %v1054_v40 = vadd.f32 %v1053_v38, %v1052_v37  ;;  %v1055_v41 = vpop.f32.mrb[6].mxu0  ;;  %v1075_v42 = vpop.f32.mrb[5].mxu1 }
 0x119   :  { %v1056_v43 = vpop.f32.mrb[7].mxu0  ;;  %v1076_v45 = vadd.f32 %v1075_v42, %v1074_v39  ;;  %v1077_v46 = vpop.f32.mrb[6].mxu1 }
 0x11a   :  { %v721_v44 = vadd.f32 %v1054_v40, %v681_v36  ;;  %v1078_v47 = vpop.f32.mrb[7].mxu1 }
 0x11c   :  { %v761_v48 = vadd.f32 %v1076_v45, %v721_v44 }
 0x11e   :  { %v766_v49 = vmax.f32 %v761_v48, 0.0 }
 0x120   :  { %v767_v50 = vpack.c.bf16 %v766_v49, %v766_v49 }
 0x122   :  { %1091 = vmatmul.mubr.msk.bf16.vlgmr.msra.gmra.mrb[8].mxu0 %vm791_vm1, %v767_v50 }
 0x1f5   :  { %v829_v53 = vpop.f32.mrb[8].mxu0 }
 0x1f6   :  { %v830_v54 = vadd.f32 %v984_v52, %v829_v53  ;;  %v1092_v55 = vpop.f32.mrb[9].mxu0 }
 0x1f7   :  { %v832_v56 = vpop.f32.mrb[10].mxu0 }
 0x1f8   :  { %v835_v57 = vmax.f32 %v830_v54, 0.0  ;;  %v1093_v58 = vpop.f32.mrb[11].mxu0 }
 0x1fa   :  { %v836_v59 = vpack.c.bf16 %v835_v57, %v835_v57 }
 0x1fc   :  { %1099 = vmatmul.mubr.msk.bf16.vlgmr.msra.gmra.mrb[8].mxu1 %vm791_vm1, %v836_v59 }
 0x2cf   :  { %v897_v61 = vpop.f32.mrb[8].mxu1 }
 0x2d0   :  { %v898_v62 = vadd.f32 %v988_v60, %v897_v61  ;;  %v1100_v63 = vpop.f32.mrb[9].mxu1 }
 0x2d1   :  { %v900_v0 = vpop.f32.mrb[10].mxu1 }
 0x2d2   :  { %v1101_v1 = vpop.f32.mrb[11].mxu1  ;;  %904 = vst.msk [vmem:[#allocation2] sm:$0x3] %vm903_vm2, %v898_v62 }
 0x2d3   :  { %1186 = shalt.err (!%p1183_p4)
}
 0x2d4   :  { %s1187_s6 = scalar_lea.hbm %s1491_s7, 32 }
 0x2d5   :  { %p1188_p5 = scmp.ne.s32.totalorder %s1491_s7, %s1187_s6  ;;  %p1191_p6 = scmp.lt.u32.totalorder %s1187_s6, %s1491_s7 }
 0x2d7   :  { %p1193_p7 = pnand %p1191_p6, %p1188_p5 }
 0x2d9   :  { %1196 = shalt.err (!%p1193_p7)
}
 0x2da   :  { %914 = dma.vmem_to_hbm [thread:$0]  %s912_s0, 32, %s1491_s7, [#allocation3]  }
 0x2db   :  { %1197 = dma.done.wait [#allocation3], 32  }
 0x2dc   :  { %1198 = vsyncadd [#allocation3], 4294967264 }
 0x2dd   :  { %918 = vsyncpa [#allocation3], 1 }

</bundles_post_ra>
